<compile_context>
chip_gen: v7x
topology: tpu7x:2x2x1
jax: 0.10.0
libtpu: 0.0.40
codegen_flags: <defaults>
</compile_context>

<pallas_src>
import functools

import jax
import jax.numpy as jnp
from jax.experimental import pallas as pl
from jax.experimental.pallas import tpu as pltpu

_SUBLANE = 8
_MAX_BATCH_TILE = 8192  # rows per grid step; multiple of 8


def _round_up(x: int, m: int) -> int:
    return ((x + m - 1) // m) * m


def _net_kernel_multiclass(x_ref, w1_ref, b1_ref, w2_ref, b2_ref, y_ref):
    # fc1 -> tanh -> fc2   (num_classes != 1 branch)
    h = jnp.tanh(
        jnp.dot(x_ref[...], w1_ref[...], preferred_element_type=jnp.float32)
        + b1_ref[...]
    )
    y = (
        jnp.dot(h, w2_ref[...], preferred_element_type=jnp.float32)
        + b2_ref[...]
    )
    y_ref[...] = y.astype(y_ref.dtype)


def _net_kernel_binary(x_ref, w1_ref, b1_ref, w2_ref, b2_ref, y_ref):
    # fc1 -> relu -> fc2 -> sigmoid   (num_classes == 1 branch)
    h = jnp.maximum(
        jnp.dot(x_ref[...], w1_ref[...], preferred_element_type=jnp.float32)
        + b1_ref[...],
        0.0,
    )
    logits = (
        jnp.dot(h, w2_ref[...], preferred_element_type=jnp.float32)
        + b2_ref[...]
    )
    y_ref[...] = jax.nn.sigmoid(logits).astype(y_ref.dtype)


@functools.partial(jax.jit, static_argnames=("num_classes",))
def net_forward(x, w1, b1, w2, b2, *, num_classes):
    """Pallas forward pass of Net.

    x:  (B, feature_dim) f32
    w1: (feature_dim, hidden) f32, b1: (1, hidden) f32
    w2: (hidden, num_classes) f32, b2: (1, num_classes) f32
    returns (B, num_classes) f32
    """
    B, f_dim = x.shape
    hidden = w1.shape[1]
    assert w2.shape == (hidden, num_classes)

    # Batch tile: multiple of 8 sublanes. No wrapper padding; Pallas handles
    # the ragged boundary block (OOB reads are harmless, OOB stores dropped).
    tb = min(_MAX_BATCH_TILE, _round_up(B, _SUBLANE))
    grid = (pl.cdiv(B, tb),)

    kernel = _net_kernel_binary if num_classes == 1 else _net_kernel_multiclass

    flops = 2 * B * (f_dim * hidden + hidden * num_classes)
    transcendentals = B * (hidden + (num_classes if num_classes == 1 else 0))
    bytes_accessed = (
        x.size * 4 + w1.size * 4 + w2.size * 4
        + b1.size * 4 + b2.size * 4 + B * num_classes * 4
    )

    return pl.pallas_call(
        kernel,
        out_shape=jax.ShapeDtypeStruct((B, num_classes), jnp.float32),
        grid=grid,
        in_specs=[
            pl.BlockSpec((tb, f_dim), lambda i: (i, 0)),            # x: batch-tiled
            pl.BlockSpec((f_dim, hidden), lambda i: (0, 0)),        # W1: resident
            pl.BlockSpec((1, hidden), lambda i: (0, 0)),            # b1: resident
            pl.BlockSpec((hidden, num_classes), lambda i: (0, 0)),  # W2: resident
            pl.BlockSpec((1, num_classes), lambda i: (0, 0)),       # b2: resident
        ],
        out_specs=pl.BlockSpec((tb, num_classes), lambda i: (i, 0)),
        compiler_params=pltpu.CompilerParams(
            dimension_semantics=("parallel",),
        ),
        cost_estimate=pl.CostEstimate(
            flops=flops,
            transcendentals=transcendentals,
            bytes_accessed=bytes_accessed,
        ),
    )(x, w1, b1, w2, b2)


def init_params(key, feature_dim, hidden_nodes, num_classes):
    """Deterministic init mirroring torch.nn.Linear's U(-1/sqrt(fan_in), ...)."""
    k1, k2, k3, k4 = jax.random.split(key, 4)
    lim1 = 1.0 / jnp.sqrt(feature_dim)
    lim2 = 1.0 / jnp.sqrt(hidden_nodes)
    w1 = jax.random.uniform(k1, (feature_dim, hidden_nodes), jnp.float32, -lim1, lim1)
    b1 = jax.random.uniform(k2, (1, hidden_nodes), jnp.float32, -lim1, lim1)
    w2 = jax.random.uniform(k3, (hidden_nodes, num_classes), jnp.float32, -lim2, lim2)
    b2 = jax.random.uniform(k4, (1, num_classes), jnp.float32, -lim2, lim2)
    return w1, b1, w2, b2


def net_forward_ref(x, w1, b1, w2, b2, *, num_classes):
    """Pure-JAX f32 reference for correctness check."""
    if num_classes != 1:
        h = jnp.tanh(x @ w1 + b1)
        return h @ w2 + b2
    h = jnp.maximum(x @ w1 + b1, 0.0)
    return jax.nn.sigmoid(h @ w2 + b2)


if __name__ == "__main__":
    key = jax.random.PRNGKey(0)
    kx, kp = jax.random.split(key)

    # Small shapes consistent with the module (authors use feature sizes 8/13/25,
    # hidden ~ 1/3 of inputs, classes in {2,3,5,7} or 1 for the binary branch).
    batch, feature_dim, hidden_nodes, num_classes = 8, 8, 32, 5

    x = jax.random.normal(kx, (batch, feature_dim), dtype=jnp.float32)
    w1, b1, w2, b2 = init_params(kp, feature_dim, hidden_nodes, num_classes)

    y = net_forward(x, w1, b1, w2, b2, num_classes=num_classes)
    jax.block_until_ready(y)
    y_ref = net_forward_ref(x, w1, b1, w2, b2, num_classes=num_classes)
    assert y.shape == (batch, num_classes)
    assert jnp.allclose(y, y_ref, atol=1e-5, rtol=1e-5)

    # num_classes == 1 (relu + sigmoid) branch.
    w1b, b1b, w2b, b2b = init_params(kp, feature_dim, hidden_nodes, 1)
    yb = net_forward(x, w1b, b1b, w2b, b2b, num_classes=1)
    jax.block_until_ready(yb)
    yb_ref = net_forward_ref(x, w1b, b1b, w2b, b2b, num_classes=1)
    assert yb.shape == (batch, 1)
    assert jnp.allclose(yb, yb_ref, atol=1e-5, rtol=1e-5)

    # Larger batch to exercise the multi-tile grid with a ragged boundary block
    # (B not a multiple of the 8192-row tile; no wrapper pad/slice).
    big_batch = 10000
    xL = jax.random.normal(kx, (big_batch, feature_dim), dtype=jnp.float32)
    yL = net_forward(xL, w1, b1, w2, b2, num_classes=num_classes)
    jax.block_until_ready(yL)
    yL_ref = net_forward_ref(xL, w1, b1, w2, b2, num_classes=num_classes)
    assert yL.shape == (big_batch, num_classes)
    assert jnp.allclose(yL, yL_ref, atol=1e-5, rtol=1e-5)

    print("KERNEL_OK")
</pallas_src>

<mosaic_0001>
module attributes {stable_mosaic.version = 11 : i64} {
  func.func @_net_kernel_multiclass(%arg0: i32, %arg1: memref<8x8xf32, #tpu.memory_space<vmem>>, %arg2: memref<8x32xf32, #tpu.memory_space<vmem>>, %arg3: memref<1x32xf32, #tpu.memory_space<vmem>>, %arg4: memref<32x5xf32, #tpu.memory_space<vmem>>, %arg5: memref<1x5xf32, #tpu.memory_space<vmem>>, %arg6: memref<8x5xf32, #tpu.memory_space<vmem>>) attributes {dimension_semantics = [#tpu.dimension_semantics<parallel>], iteration_bounds = array<i64: 1>, scalar_prefetch = 0 : i64, scratch_operands = 0 : i64, tpu.core_type = #tpu.core_type<tc>, window_params = [{transform_indices = @transform_0, window_bounds = array<i64: 8, 8>}, {pipeline_mode = #tpu.pipeline_mode<synchronous>, transform_indices = @transform_1, window_bounds = array<i64: 8, 32>}, {pipeline_mode = #tpu.pipeline_mode<synchronous>, transform_indices = @transform_2, window_bounds = array<i64: 1, 32>}, {pipeline_mode = #tpu.pipeline_mode<synchronous>, transform_indices = @transform_3, window_bounds = array<i64: 32, 5>}, {pipeline_mode = #tpu.pipeline_mode<synchronous>, transform_indices = @transform_4, window_bounds = array<i64: 1, 5>}, {transform_indices = @transform_5, window_bounds = array<i64: 8, 5>}]} {
    %c0 = arith.constant 0 : index
    %c0_0 = arith.constant 0 : index
    %0 = vector.load %arg1[%c0, %c0_0] : memref<8x8xf32, #tpu.memory_space<vmem>>, vector<8x8xf32>
    %c0_1 = arith.constant 0 : index
    %c0_2 = arith.constant 0 : index
    %1 = vector.load %arg2[%c0_1, %c0_2] : memref<8x32xf32, #tpu.memory_space<vmem>>, vector<8x32xf32>
    %cst = arith.constant dense<0.000000e+00> : vector<8x32xf32>
    %2 = tpu.matmul %0, %1, %cst {dimension_numbers = #tpu.dot_dimension_numbers<[1], [0], [0], [1], [0, 0, 1, 1], [], []>} : vector<8x8xf32>, vector<8x32xf32>, vector<8x32xf32> -> vector<8x32xf32>
    %c0_3 = arith.constant 0 : index
    %c0_4 = arith.constant 0 : index
    %3 = vector.load %arg3[%c0_3, %c0_4] : memref<1x32xf32, #tpu.memory_space<vmem>>, vector<1x32xf32>
    %4 = vector.broadcast %3 : vector<1x32xf32> to vector<8x32xf32>
    %5 = arith.addf %2, %4 : vector<8x32xf32>
    %6 = math.tanh %5 : vector<8x32xf32>
    %c0_5 = arith.constant 0 : index
    %c0_6 = arith.constant 0 : index
    %7 = vector.load %arg4[%c0_5, %c0_6] : memref<32x5xf32, #tpu.memory_space<vmem>>, vector<32x5xf32>
    %cst_7 = arith.constant dense<0.000000e+00> : vector<8x5xf32>
    %8 = tpu.matmul %6, %7, %cst_7 {dimension_numbers = #tpu.dot_dimension_numbers<[1], [0], [0], [1], [0, 0, 1, 1], [], []>} : vector<8x32xf32>, vector<32x5xf32>, vector<8x5xf32> -> vector<8x5xf32>
    %c0_8 = arith.constant 0 : index
    %c0_9 = arith.constant 0 : index
    %9 = vector.load %arg5[%c0_8, %c0_9] : memref<1x5xf32, #tpu.memory_space<vmem>>, vector<1x5xf32>
    %10 = vector.broadcast %9 : vector<1x5xf32> to vector<8x5xf32>
    %11 = arith.addf %8, %10 : vector<8x5xf32>
    %c0_10 = arith.constant 0 : index
    %c0_11 = arith.constant 0 : index
    %12 = vector.load %arg6[%c0_10, %c0_11] : memref<8x5xf32, #tpu.memory_space<vmem>>, vector<8x5xf32>
    tpu.vector_store %arg6[%c0_10, %c0_11], %11 {strides = array<i32>} : memref<8x5xf32, #tpu.memory_space<vmem>>, vector<8x5xf32>,
    return
  }
  func.func @transform_0(%arg0: i32) -> (i32, i32) {
    %c0_i32 = arith.constant 0 : i32
    %c0_i32_0 = arith.constant 0 : i32
    return %arg0, %c0_i32 : i32, i32
  }
  func.func @transform_1(%arg0: i32) -> (i32, i32) {
    %c0_i32 = arith.constant 0 : i32
    %c0_i32_0 = arith.constant 0 : i32
    %c0_i32_1 = arith.constant 0 : i32
    return %c0_i32, %c0_i32_0 : i32, i32
  }
  func.func @transform_2(%arg0: i32) -> (i32, i32) {
    %c0_i32 = arith.constant 0 : i32
    %c0_i32_0 = arith.constant 0 : i32
    %c0_i32_1 = arith.constant 0 : i32
    return %c0_i32, %c0_i32_0 : i32, i32
  }
  func.func @transform_3(%arg0: i32) -> (i32, i32) {
    %c0_i32 = arith.constant 0 : i32
    %c0_i32_0 = arith.constant 0 : i32
    %c0_i32_1 = arith.constant 0 : i32
    return %c0_i32, %c0_i32_0 : i32, i32
  }
  func.func @transform_4(%arg0: i32) -> (i32, i32) {
    %c0_i32 = arith.constant 0 : i32
    %c0_i32_0 = arith.constant 0 : i32
    %c0_i32_1 = arith.constant 0 : i32
    return %c0_i32, %c0_i32_0 : i32, i32
  }
  func.func @transform_5(%arg0: i32) -> (i32, i32) {
    %c0_i32 = arith.constant 0 : i32
    %c0_i32_0 = arith.constant 0 : i32
    return %arg0, %c0_i32 : i32, i32
  }
}

</mosaic_0001>

<bundles_post_ra>
// kernel: net_forward.1
= control target key start
LH: loop header
LB: loop body
LE: loop exit
PB: predicated region body
PF: predicated region fallthrough
CT: control target
= control target key end

     0   :  { %vm30_vm0 = vcmask 64512   ;;  %v269_v2 = vmov 0.0   ;;  %vm270_vm1 = vmmov 0   ;;  %s339_s0 = inlined_call_operand.vmem [shape: f32[8,8], index: 0, kind: input, shape index: {}]   ;;  %s340_s1 = inlined_call_operand.vmem [shape: f32[8,32], index: 1, kind: input, shape index: {}]   ;;  %s341_s2 = inlined_call_operand.vmem [shape: f32[1,32], index: 2, kind: input, shape index: {}]   ;;  %s342_s3 = inlined_call_operand.vmem [shape: f32[32,5], index: 3, kind: input, shape index: {}]   ;;  %s343_s4 = inlined_call_operand.vmem [shape: f32[1,5], index: 4, kind: input, shape index: {}]   ;;  %s344_s5 = inlined_call_operand.hbm [shape: f32[8,5], index: 5, kind: output, shape index: {}]  }
   0x1   :  { %v22_v0 = vld [vmem:[%s340_s1] sm:$0xff]  ;;  %217 = vmatprep.subr.mxu0 %v269_v2  ;;  %219 = vmatprep.mubr.msk.f32.mxu0 %vm270_vm1, %v269_v2 }
   0x2   :  { %v21_v1 = vld [vmem:[%s339_s0] sm:$0xff] }
   0x3   :  { %10 = vsyncpa [#allocation3], 0  ;;  %218 = vmatpush3.msra.mxu0 %v22_v0  ;;  %230 = vmatprep.mubr.msk.f32.mxu1 %vm270_vm1, %v269_v2  ;;  %v105_v3 = vld [vmem:[%s342_s3] sm:$0xff]  ;;  %v106_v4 = vld [vmem:[%s342_s3 + $0x8] sm:$0xff]  ;;  %v271_v6 = vmov 0.0|0.0   ;;  %vm116_vm2 = vcmask 261120  }
   0x4   :  { %220 = vmatmul.mubr.msk.f32.vlgmr.msra.gmra.mrb[0].mxu0 %vm30_vm0, %v21_v1  ;;  %v107_v5 = vld [vmem:[%s342_s3 + $0x10] sm:$0xff]  ;;  %233 = vmatprep.subr.bf16.mxu1 %v271_v6  ;;  %v234_v7 = vpack.c.bf16 %v106_v4, %v105_v3  ;;  %v108_v8 = vld [vmem:[%s342_s3 + $0x18] sm:$0xff]  ;;  %v206_v10 = vld [vmem:[%s341_s2] ss:$0 sm:$0xff]  ;;  %s272_s3 = smov [#allocation2]   ;;  %vm190_vm3 = vcmask 39936  }
   0x5   :  { %v237_v9 = vpack.c.bf16 %v108_v8, %v107_v5  ;;  %v208_v15 = vld [vmem:[%s343_s4] ss:$0 sm:$0xff]  ;;  %s198_s7 = sshll.u32 %s272_s3, 4  ;;  %s199_s7 = int_to_ptr.vmem [resolvable:$true] %s198_s7 }
   0x6   :  { %235 = vmatpush3.bf16.msra.mxu1 %v234_v7  ;;  %s245_s2 = scalar_lea.vmem %s199_s7, 128  ;;  %p250_p1 = scmp.lt.s32.totalorder %s199_s7, %s199_s7 }
   0x7   :  { %236 = vmatprep.subr.bf16.mxu1 %v271_v6  ;;  %p246_p0 = scmp.ne.s32.totalorder %s199_s7, %s245_s2  ;;  %p251_p2 = scmp.lt.s32.totalorder %s245_s2, %s245_s2 }
   0x9   :  { %p252_p3 = por %p251_p2, %p250_p1 }
   0xa   :  { %238 = vmatpush3.bf16.msra.mxu1 %v237_v9 }
   0xb   :  { %p253_p4 = pnand %p252_p3, %p246_p0 }
  0xd7   :  { %v100_v11 = vpop.f32.mrb[0].mxu0 }
  0xd8   :  { %v101_v12 = vadd.f32 %v206_v10, %v100_v11  ;;  %v221_v13 = vpop.f32.mrb[1].mxu0 }
  0xda   :  { %243 = vtanh.f32 %v101_v12 }
  0xe4   :  { %v244_v14 = vpop.eup %243 }
  0xe5   :  { %231 = vmatmul.mubr.msk.f32.vlgmr.msra.gmra.mrb[0].mxu1 %vm116_vm2, %v244_v14 }
 0x1b8   :  { %v186_v16 = vpop.f32.mrb[0].mxu1 }
 0x1b9   :  { %v187_v17 = vadd.f32 %v208_v15, %v186_v16  ;;  %v232_v18 = vpop.f32.mrb[1].mxu1 }
 0x1bb   :  { %191 = vst.msk [vmem:[#allocation2] sm:$0xff] %vm190_vm3, %v187_v17 }
 0x1bc   :  { %256 = shalt.err (!%p253_p4)
}
 0x1bd   :  { %s257_s10 = scalar_lea.hbm %s344_s5, 128 }
 0x1be   :  { %p258_p5 = scmp.ne.s32.totalorder %s344_s5, %s257_s10  ;;  %p261_p6 = scmp.lt.u32.totalorder %s257_s10, %s344_s5 }
 0x1c0   :  { %p263_p7 = pnand %p261_p6, %p258_p5 }
 0x1c2   :  { %266 = shalt.err (!%p263_p7)
}
 0x1c3   :  { %201 = dma.vmem_to_hbm [thread:$0]  %s199_s7, 128, %s344_s5, [#allocation3]  }
 0x1c4   :  { %267 = dma.done.wait [#allocation3], 128  }
 0x1c5   :  { %268 = vsyncadd [#allocation3], 4294967168 }
 0x1c6   :  { %205 = vsyncpa [#allocation3], 1 }

</bundles_post_ra>
